<compile_context>
chip_gen: v5e
topology: v5e:2x2
jax: 0.10.0
libtpu: 0.0.40
codegen_flags: <defaults>
</compile_context>

<pallas_src>
import jax
import jax.numpy as jnp
from jax import lax
from jax.experimental import pallas as pl
from jax.experimental.pallas import tpu as pltpu


# ---------------------------------------------------------------------------
# Pass 1: per-(phase, M-tile) transposed-conv matmul (MXU) -> channel sum/sumsq
#         partials only (no conv output is written to HBM).
# ---------------------------------------------------------------------------
def _stats_kernel(w_ref, patch_ref, sum_ref, sq_ref):
    # w_ref:     (1, Cp, Kc)      bf16  per-phase weight (channels-first)
    # patch_ref: (1, Kc, TILE_M)  bf16  per-phase patch slab tile (lane-dense)
    # sum_ref:   (1, 1, Cp, 128)  f32   per-(phase, tile) channel sums (lane-bcast)
    # sq_ref:    (1, 1, Cp, 128)  f32   per-(phase, tile) channel sum-of-squares
    w = w_ref[0]                                                 # (Cp, Kc)
    patch = patch_ref[0]                                         # (Kc, TILE_M)
    y = jnp.dot(w, patch, preferred_element_type=jnp.float32)    # (Cp, TILE_M) f32
    cp = y.shape[0]
    s = jnp.sum(y, axis=1, keepdims=True)                        # (Cp, 1) lane-reduce (XLU)
    sq = jnp.sum(y * y, axis=1, keepdims=True)                   # (Cp, 1)
    sum_ref[0, 0] = jnp.broadcast_to(s, (cp, 128))
    sq_ref[0, 0] = jnp.broadcast_to(sq, (cp, 128))


# ---------------------------------------------------------------------------
# Pass 2: recompute the conv matmul, fuse BatchNorm affine (precombined
#         scale/shift) + LeakyReLU(0.2), single f32 store.
# ---------------------------------------------------------------------------
def _conv_bn_lrelu_kernel(w_ref, patch_ref, scale_ref, shift_ref, o_ref):
    w = w_ref[0]                                                 # (Cp, Kc) bf16
    patch = patch_ref[0]                                         # (Kc, TILE_M) bf16
    y = jnp.dot(w, patch, preferred_element_type=jnp.float32)    # (Cp, TILE_M) f32
    z = y * scale_ref[...] + shift_ref[...]                      # (Cp,1) lane-broadcasts
    o_ref[0] = jnp.where(z > 0, z, 0.2 * z)


# ---------------------------------------------------------------------------
# Wrapper: phase decomposition, patch/weight prep (XLA glue), two pallas_calls.
# ---------------------------------------------------------------------------
def _phase_taps(K, stride, pad, p):
    """Kernel taps contributing to output phase p (o = q*stride + p)."""
    ks = [k for k in range(K) if (k - p - pad) % stride == 0]
    ts = [(p + pad - k) // stride for k in ks]     # input index = q + t
    return ks, ts


def _pick_tile_m(m, kc, cp):
    # Keep per-step (2x patch + out) blocks tiny relative to the 32 MiB scoped
    # VMEM default even with double buffering; prefer large lane-dense tiles.
    budget = 4 << 20
    for t in (2048, 1024, 512, 256, 128):
        if m % t == 0 and t * (2 * kc + 4 * cp) <= budget:
            return t
    return m  # full-extent block (legal even when m is not a multiple of 128)


def horse_unit(x_nchw, weight, gamma, beta, *, stride, pad, eps=1e-5):
    """x_nchw: (N, Cin, H, W); weight: (Cin, Cout, K, K) (PyTorch ConvTranspose2d)."""
    N, Cin, H, W = x_nchw.shape
    cin_w, Cout, K, K2 = weight.shape
    assert K == K2 and cin_w == Cin
    s = stride
    OH = (H - 1) * s - 2 * pad + K
    OW = (W - 1) * s - 2 * pad + K

    # --- static phase-decomposition tables --------------------------------
    taps = [_phase_taps(K, s, pad, p) for p in range(s)]
    T = len(taps[0][0])
    assert T > 0 and all(len(ks) == T for ks, _ in taps), "unsupported K/stride/pad"
    ohp = [-(-(OH - p) // s) for p in range(s)]
    owp = [-(-(OW - p) // s) for p in range(s)]
    assert all(v == ohp[0] for v in ohp) and all(v == owp[0] for v in owp)
    OHp, OWp = ohp[0], owp[0]
    assert OH == s * OHp and OW == s * OWp

    all_t = [t for _, ts in taps for t in ts]
    pad_lo = max(0, -min(all_t))
    pad_hi_h = max(0, (OHp - 1) + max(all_t) - (H - 1))
    pad_hi_w = max(0, (OWp - 1) + max(all_t) - (W - 1))

    P = s * s
    Kc = T * T * Cin                      # fused contraction depth per phase
    M = N * OHp * OWp                     # output pixels per phase (lane axis)
    Cp = ((Cout + 7) // 8) * 8            # channels padded to sublane multiple

    # --- layout prep (cheap XLA glue, not the hot path) --------------------
    x = jnp.transpose(x_nchw, (0, 2, 3, 1)).astype(jnp.float32)         # NHWC
    xpad = jnp.pad(x, ((0, 0), (pad_lo, pad_hi_h), (pad_lo, pad_hi_w), (0, 0)))

    patches, wts = [], []
    for ph in range(s):
        ks_h, ts_h = taps[ph]
        for pw in range(s):
            ks_w, ts_w = taps[pw]
            cols = []
            for th in ts_h:
                for tw in ts_w:
                    cols.append(xpad[:, pad_lo + th: pad_lo + th + OHp,
                                     pad_lo + tw: pad_lo + tw + OWp, :])
            pt = jnp.stack(cols, axis=0)                       # (T*T,N,OHp,OWp,Cin)
            pt = jnp.transpose(pt, (0, 4, 1, 2, 3)).reshape(Kc, M)
            patches.append(pt)
            wsub = weight[:, :, jnp.array(ks_h), :][:, :, :, jnp.array(ks_w)]
            wsub = jnp.transpose(wsub, (1, 2, 3, 0)).reshape(Cout, Kc)
            wts.append(jnp.pad(wsub, ((0, Cp - Cout), (0, 0))))

    patch_all = jnp.stack(patches, axis=0).astype(jnp.bfloat16)   # (P, Kc, M)
    w_all = jnp.stack(wts, axis=0).astype(jnp.bfloat16)           # (P, Cp, Kc)

    TILE_M = _pick_tile_m(M, Kc, Cp)
    nT = M // TILE_M if M % TILE_M == 0 else 1
    if nT == 1:
        TILE_M = M

    par2 = pltpu.CompilerParams(dimension_semantics=("parallel", "parallel"))

    # --- pass 1: per-channel partial stats only (conv output stays in VMEM) ---
    psum, psq = pl.pallas_call(
        _stats_kernel,
        out_shape=(
            jax.ShapeDtypeStruct((P, nT, Cp, 128), jnp.float32),
            jax.ShapeDtypeStruct((P, nT, Cp, 128), jnp.float32),
        ),
        grid=(P, nT),
        in_specs=[
            pl.BlockSpec((1, Cp, Kc), lambda p, t: (p, 0, 0)),
            pl.BlockSpec((1, Kc, TILE_M), lambda p, t: (p, 0, t)),
        ],
        out_specs=(
            pl.BlockSpec((1, 1, Cp, 128), lambda p, t: (p, t, 0, 0)),
            pl.BlockSpec((1, 1, Cp, 128), lambda p, t: (p, t, 0, 0)),
        ),
        compiler_params=par2,
    )(w_all, patch_all)

    # --- tiny glue: reduce partials, build BN scale/shift (train-mode stats) ---
    count = jnp.float32(P * M)                      # = N * OH * OW
    sum_c = jnp.sum(psum[..., 0], axis=(0, 1))      # (Cp,)
    sq_c = jnp.sum(psq[..., 0], axis=(0, 1))
    mean = sum_c / count
    var = jnp.maximum(sq_c / count - mean * mean, 0.0)   # biased var (train-mode BN)
    gamma_p = jnp.pad(gamma.astype(jnp.float32), (0, Cp - Cout))
    beta_p = jnp.pad(beta.astype(jnp.float32), (0, Cp - Cout))
    scale = gamma_p * lax.rsqrt(var + eps)
    shift = beta_p - mean * scale
    scale2 = scale.reshape(Cp, 1)
    shift2 = shift.reshape(Cp, 1)

    # --- pass 2: recompute conv + fused BN scale/shift + LeakyReLU ----------
    #             (Dropout2d = identity, eval semantics)
    z = pl.pallas_call(
        _conv_bn_lrelu_kernel,
        out_shape=jax.ShapeDtypeStruct((P, Cp, M), jnp.float32),
        grid=(P, nT),
        in_specs=[
            pl.BlockSpec((1, Cp, Kc), lambda p, t: (p, 0, 0)),
            pl.BlockSpec((1, Kc, TILE_M), lambda p, t: (p, 0, t)),
            pl.BlockSpec((Cp, 1), lambda p, t: (0, 0)),
            pl.BlockSpec((Cp, 1), lambda p, t: (0, 0)),
        ],
        out_specs=pl.BlockSpec((1, Cp, TILE_M), lambda p, t: (p, 0, t)),
        compiler_params=par2,
    )(w_all, patch_all, scale2, shift2)

    # --- un-interleave phases back to NCHW (XLA glue) -----------------------
    z = z[:, :Cout, :].reshape(s, s, Cout, N, OHp, OWp)
    out = jnp.transpose(z, (3, 2, 4, 0, 5, 1)).reshape(N, Cout, OH, OW)
    return out


# ---------------------------------------------------------------------------
# Pure-JAX reference (same math / same bf16 matmul-operand precision).
# ---------------------------------------------------------------------------
def horse_unit_ref(x_nchw, weight, gamma, beta, *, stride, pad, eps=1e-5):
    N, Cin, H, W = x_nchw.shape
    _, Cout, K, _ = weight.shape
    x = jnp.transpose(x_nchw, (0, 2, 3, 1)).astype(jnp.bfloat16)
    wf = jnp.transpose(weight[:, :, ::-1, ::-1], (2, 3, 0, 1)).astype(jnp.bfloat16)
    e = K - 1 - pad
    y = lax.conv_general_dilated(
        x, wf, window_strides=(1, 1), padding=[(e, e), (e, e)],
        lhs_dilation=(stride, stride),
        dimension_numbers=("NHWC", "HWIO", "NHWC"),
        preferred_element_type=jnp.float32)
    mean = jnp.mean(y, axis=(0, 1, 2), keepdims=True)
    var = jnp.mean((y - mean) ** 2, axis=(0, 1, 2), keepdims=True)
    yn = (y - mean) * lax.rsqrt(var + eps) * gamma.reshape(1, 1, 1, -1) \
         + beta.reshape(1, 1, 1, -1)
    yn = jnp.where(yn > 0, yn, 0.2 * yn)
    return jnp.transpose(yn, (0, 3, 1, 2))


if __name__ == "__main__":
    # HorseUnit(inChannels=4, outChannels=8, kernelSize=4, stride=2, pad=1)
    N, Cin, H, W = 2, 4, 16, 16
    Cout, K, stride, pad = 8, 4, 2, 1

    key = jax.random.PRNGKey(0)
    kx, kw = jax.random.split(key)
    x = jax.random.normal(kx, (N, Cin, H, W), dtype=jnp.float32)
    weight = 0.1 * jax.random.normal(kw, (Cin, Cout, K, K), dtype=jnp.float32)
    gamma = jnp.ones((Cout,), jnp.float32)   # BatchNorm2d default weight
    beta = jnp.zeros((Cout,), jnp.float32)   # BatchNorm2d default bias

    out = horse_unit(x, weight, gamma, beta, stride=stride, pad=pad)
    out = jax.block_until_ready(out)

    ref = horse_unit_ref(x, weight, gamma, beta, stride=stride, pad=pad)
    OH = (H - 1) * stride - 2 * pad + K
    OW = (W - 1) * stride - 2 * pad + K
    assert out.shape == (N, Cout, OH, OW)
    assert float(jnp.max(jnp.abs(out - ref))) < 1e-3

    print("KERNEL_OK")
</pallas_src>

<mosaic_0001>
module attributes {stable_mosaic.version = 11 : i64} {
  func.func @_stats_kernel(%arg0: i32, %arg1: i32, %arg2: memref<1x8x16xbf16, #tpu.memory_space<vmem>>, %arg3: memref<1x16x512xbf16, #tpu.memory_space<vmem>>, %arg4: memref<1x1x8x128xf32, #tpu.memory_space<vmem>>, %arg5: memref<1x1x8x128xf32, #tpu.memory_space<vmem>>) attributes {dimension_semantics = [#tpu.dimension_semantics<parallel>, #tpu.dimension_semantics<parallel>], iteration_bounds = array<i64: 4, 1>, scalar_prefetch = 0 : i64, scratch_operands = 0 : i64, tpu.core_type = #tpu.core_type<tc>, window_params = [{transform_indices = @transform_0, window_bounds = array<i64: 1, 8, 16>}, {transform_indices = @transform_1, window_bounds = array<i64: 1, 16, 512>}, {transform_indices = @transform_2, window_bounds = array<i64: 1, 1, 8, 128>}, {transform_indices = @transform_3, window_bounds = array<i64: 1, 1, 8, 128>}]} {
    %c0 = arith.constant 0 : index
    %c0_0 = arith.constant 0 : index
    %c0_1 = arith.constant 0 : index
    %0 = vector.load %arg2[%c0, %c0_0, %c0_1] : memref<1x8x16xbf16, #tpu.memory_space<vmem>>, vector<1x8x16xbf16>
    %1 = vector.shape_cast %0 : vector<1x8x16xbf16> to vector<8x16xbf16>
    %c0_2 = arith.constant 0 : index
    %c0_3 = arith.constant 0 : index
    %c0_4 = arith.constant 0 : index
    %2 = vector.load %arg3[%c0_2, %c0_3, %c0_4] : memref<1x16x512xbf16, #tpu.memory_space<vmem>>, vector<1x16x512xbf16>
    %3 = vector.shape_cast %2 : vector<1x16x512xbf16> to vector<16x512xbf16>
    %cst = arith.constant dense<0.000000e+00> : vector<8x512xf32>
    %4 = tpu.matmul %1, %3, %cst {dimension_numbers = #tpu.dot_dimension_numbers<[1], [0], [0], [1], [0, 0, 1, 1], [], []>} : vector<8x16xbf16>, vector<16x512xbf16>, vector<8x512xf32> -> vector<8x512xf32>
    %cst_5 = arith.constant dense<0.000000e+00> : vector<8xf32>
    %5 = vector.multi_reduction <add>, %4, %cst_5 [1] : vector<8x512xf32> to vector<8xf32>
    %6 = vector.shape_cast %5 : vector<8xf32> to vector<8x1xf32>
    %7 = arith.mulf %4, %4 : vector<8x512xf32>
    %cst_6 = arith.constant dense<0.000000e+00> : vector<8xf32>
    %8 = vector.multi_reduction <add>, %7, %cst_6 [1] : vector<8x512xf32> to vector<8xf32>
    %9 = vector.shape_cast %8 : vector<8xf32> to vector<8x1xf32>
    %10 = vector.shape_cast %6 : vector<8x1xf32> to vector<8x1xf32>
    %11 = vector.broadcast %10 : vector<8x1xf32> to vector<8x128xf32>
    %c0_7 = arith.constant 0 : index
    %c0_8 = arith.constant 0 : index
    %c0_9 = arith.constant 0 : index
    %c0_10 = arith.constant 0 : index
    %12 = vector.load %arg4[%c0_7, %c0_8, %c0_9, %c0_10] : memref<1x1x8x128xf32, #tpu.memory_space<vmem>>, vector<1x1x8x128xf32>
    %13 = vector.shape_cast %12 : vector<1x1x8x128xf32> to vector<8x128xf32>
    %14 = vector.shape_cast %11 : vector<8x128xf32> to vector<1x1x8x128xf32>
    tpu.vector_store %arg4[%c0_7, %c0_8, %c0_9, %c0_10], %14 {strides = array<i32>} : memref<1x1x8x128xf32, #tpu.memory_space<vmem>>, vector<1x1x8x128xf32>,
    %15 = vector.shape_cast %9 : vector<8x1xf32> to vector<8x1xf32>
    %16 = vector.broadcast %15 : vector<8x1xf32> to vector<8x128xf32>
    %c0_11 = arith.constant 0 : index
    %c0_12 = arith.constant 0 : index
    %c0_13 = arith.constant 0 : index
    %c0_14 = arith.constant 0 : index
    %17 = vector.load %arg5[%c0_11, %c0_12, %c0_13, %c0_14] : memref<1x1x8x128xf32, #tpu.memory_space<vmem>>, vector<1x1x8x128xf32>
    %18 = vector.shape_cast %17 : vector<1x1x8x128xf32> to vector<8x128xf32>
    %19 = vector.shape_cast %16 : vector<8x128xf32> to vector<1x1x8x128xf32>
    tpu.vector_store %arg5[%c0_11, %c0_12, %c0_13, %c0_14], %19 {strides = array<i32>} : memref<1x1x8x128xf32, #tpu.memory_space<vmem>>, vector<1x1x8x128xf32>,
    return
  }
  func.func @transform_0(%arg0: i32, %arg1: i32) -> (i32, i32, i32) {
    %c0_i32 = arith.constant 0 : i32
    %c0_i32_0 = arith.constant 0 : i32
    %c0_i32_1 = arith.constant 0 : i32
    return %arg0, %c0_i32, %c0_i32_0 : i32, i32, i32
  }
  func.func @transform_1(%arg0: i32, %arg1: i32) -> (i32, i32, i32) {
    %c0_i32 = arith.constant 0 : i32
    %c0_i32_0 = arith.constant 0 : i32
    return %arg0, %c0_i32, %arg1 : i32, i32, i32
  }
  func.func @transform_2(%arg0: i32, %arg1: i32) -> (i32, i32, i32, i32) {
    %c0_i32 = arith.constant 0 : i32
    %c0_i32_0 = arith.constant 0 : i32
    %c0_i32_1 = arith.constant 0 : i32
    return %arg0, %arg1, %c0_i32, %c0_i32_0 : i32, i32, i32, i32
  }
  func.func @transform_3(%arg0: i32, %arg1: i32) -> (i32, i32, i32, i32) {
    %c0_i32 = arith.constant 0 : i32
    %c0_i32_0 = arith.constant 0 : i32
    %c0_i32_1 = arith.constant 0 : i32
    return %arg0, %arg1, %c0_i32, %c0_i32_0 : i32, i32, i32, i32
  }
}

</mosaic_0001>

<bundles_post_ra>
// kernel: tpu_custom_call.1
= control target key start
LH: loop header
LB: loop body
LE: loop exit
PB: predicated region body
PF: predicated region fallthrough
CT: control target
= control target key end

     0   :  { %9 = vsyncpa [#allocation3], 0  ;;  %s1014_s0 = inlined_call_operand.hbm [shape: bf16[4,8,16], index: 0, kind: input, shape index: {}]   ;;  %s1015_s1 = inlined_call_operand.hbm [shape: bf16[4,16,512], index: 1, kind: input, shape index: {}]   ;;  %s1016_s2 = inlined_call_operand.hbm [shape: f32[4,1,8,128], index: 2, kind: output, shape index: {0}]   ;;  %s1017_s3 = inlined_call_operand.hbm [shape: f32[4,1,8,128], index: 3, kind: output, shape index: {1}]  }
   0x1   :  { %11 = vsyncpa [#allocation3 + $0x1], 0 }
   0x2   :  { %12 = vsyncpa [#allocation6], 0 }
   0x3   :  { %14 = vsyncpa [#allocation6 + $0x1], 0 }
   0x4   :  { %15 = vsyncpa [#allocation4], 0 }
   0x5   :  { %17 = vsyncpa [#allocation4 + $0x1], 0 }
   0x6   :  { %18 = vsyncpa [#allocation9], 0 }
   0x7   :  { %20 = vsyncpa [#allocation9 + $0x1], 0  ;;  %s857_s12 = smov 0   ;;  %s859_s13 = smov 0  }
   0x8   :  { %s861_s14 = smov 0   ;;  %s863_s15 = smov 0  }
   0x9   :  { %s865_s16 = smov 0   ;;  %s867_s17 = smov 0  }
   0xa LB: > { %s536_s18 = sadd.s32 4294967295, %s833_s17   ;;  %s537_s19 = sadd.s32 4294967294, %s833_s17   ;;  %s833_s17 = sphi %s867_s17, %s26_s17   ;;  %s829_s16 = sphi %s865_s16, %s1027_s16   ;;  %s825_s15 = sphi %s863_s15, %s1026_s15   ;;  %s821_s14 = sphi %s861_s14, %s1025_s14   ;;  %s817_s13 = sphi %s859_s13, %s1024_s13   ;;  %s813_s12 = sphi %s857_s12, %s1023_s12  }
   0xb   : > { %s38_s20 = sadd.s32 1, %s829_s16  ;;  %s45_s21 = sadd.s32 1, %s821_s14 }
   0xc   : > { %p40_p0 = scmp.ge.s32.totalorder %s38_s20, 4  ;;  %p52_p1 = scmp.ne.s32.totalorder %s821_s14, %s817_s13 }
   0xd   : > { %p53_p2 = scmp.eq.s32.totalorder %s833_s17, 0  ;;  %p58_p3 = scmp.ne.s32.totalorder %s817_s13, %s813_s12 }
   0xe   : > { %s1029_s20 = smov (%p40_p0, %s38_s20), 0  ;;  %p59_p5 = scmp.eq.s32.totalorder %s536_s18, 0 }
   0xf   : > { %p898_p4 = por %p53_p2, %p52_p1  ;;  %s42_s23 = ssub.s32 %s829_s16, %s1029_s20 }
  0x10   : > { %p112_p6 = scmp.eq.s32.totalorder %s536_s18, 3  ;;  %p43_p7 = scmp.eq.s32.totalorder %s42_s23, 0 }
  0x11   : > { %p904_p8 = por %p59_p5, %p58_p3  ;;  %p118_p10 = scmp.eq.s32.totalorder %s537_s19, 3 }
  0x12   : > { %p908_p9 = por %p112_p6, %p52_p1  ;;  %p603_p12 = scmp.lt.s32.totalorder %s833_s17, 4 }
  0x13   : > { %s913_s26 = scalar_select %p43_p7, %s821_s14, %s45_s21  }
  0x14   : > { %p915_p11 = por %p118_p10, %p58_p3  ;;  %s921_s28 = sand.u32 1, %s821_s14  }
  0x15   : > { %s540_s29 = sshll.u32 %s921_s28, 2  ;;  %s541_s30 = sshll.u32 %s829_s16, 2 }
  0x16   : > { %s174_s6 = scalar_lea.hbm %s1014_s0, %s541_s30  ;;  %s170_s7 = scalar_lea.vmem [#allocation2], %s540_s29 }
  0x17   : > { %s178_s8 = sshll.u32 %s170_s7, 4  ;;  %s176_s9 = sshll.u32 %s174_s6, 4  ;;  %s179_s8 = int_to_ptr.vmem [resolvable:$true] %s178_s8  ;;  %s177_s9 = int_to_ptr.hbm [resolvable:$true] %s176_s9 }
  0x18   : > { %p930_p13 = pnand %p603_p12, %p898_p4  ;;  %p545_p0 = scmp.ge.s32.totalorder %s833_s17, 1 }
  0x19   : > { %p207_p1 = scmp.lt.s32.totalorder %s833_s17, 5  ;;  %s167_s11 = scalar_lea.sflag [#allocation3], %s921_s28 }
  0x1a   : > { %592 = dma.hbm_to_vmem [thread:$0]  (!%p930_p13), %s177_s9, 64, %s179_s8, %s167_s11  }
  0x1b   : > { %p208_p2 = pnand %p545_p0, %p207_p1  ;;  %s542_s18 = sshll.u32 %s921_s28, 5 }
  0x1c   : > { %s576_s19 = sshll.u32 %s829_s16, 5  ;;  %s189_s30 = scalar_lea.vmem [#allocation5], %s542_s18 }
  0x1d   : > { %s196_s29 = scalar_lea.hbm %s1015_s1, %s576_s19  ;;  %s199_s22 = sshll.u32 %s189_s30, 4  ;;  %s200_s22 = int_to_ptr.vmem [resolvable:$true] %s199_s22 }
  0x1e   : > { %s197_s4 = sshll.u32 %s196_s29, 4  ;;  %s186_s5 = scalar_lea.sflag [#allocation6], %s921_s28  ;;  %s198_s4 = int_to_ptr.hbm [resolvable:$true] %s197_s4 }
  0x1f   : > { %s835_s6 = smov 256   ;;  %s836_s7 = smov 16  }
  0x20   : > { %595 = dma.hbm_to_vmem [thread:$0]  (!%p930_p13), %s198_s4, 512, %s200_s22, %s186_s5, %s835_s6, %s835_s6, %s836_s7  }
  0x21   : > { %211 = sbr.rel (%p208_p2) target bundleno = 319 (0x13f), region = 28  ;;  %s948_s8 = sand.u32 (!%p208_p2), 1, %s817_s13  }
  0x22   : > { %s546_s9 = sshll.u32 (!%p208_p2), %s948_s8, 2  ;;  %s214_s11 = scalar_lea.sflag (!%p208_p2), [#allocation3], %s948_s8 }
  0x23   : > { %s217_s19 = scalar_lea.vmem (!%p208_p2), [#allocation2], %s546_s9 }
  0x26   : > { %796 = dma.done.wait (%p904_p8), %s214_s11, 64  }
  0x27   : > { %798 = vsyncadd (%p904_p8), %s214_s11, 4294967232  ;;  %s547_s28 = sshll.u32 %s948_s8, 5  ;;  %s224_s10 = scalar_lea.sflag [#allocation6], %s948_s8 }
  0x28   : > { %s227_s18 = scalar_lea.vmem [#allocation5], %s547_s28 }
  0x29   : > { %800 = dma.done.wait (%p904_p8), %s224_s10, 512  }
  0x2a   : > { %802 = vsyncadd (%p904_p8), %s224_s10, 4294966784  ;;  %v552_v0 = vld [vmem:[%s227_s18] sm:$0xf]  ;;  %v579_v1 = vld [vmem:[%s227_s18 + $0xc] sm:$0xf0]  ;;  %vm288_vm0 = vcmask 130048  }
  0x2b   : > { %v577_v2 = vld [vmem:[%s227_s18 + $0x4] sm:$0xf]  ;;  %v553_v3 = vor.u32 %v579_v1, %v552_v0  ;;  %v554_v4 = vld [vmem:[%s227_s18 + $0x10] sm:$0xf0]  ;;  %v560_v5 = vld [vmem:[%s227_s18 + $0x8] sm:$0xf] }
  0x2c   : > { %v580_v6 = vld [vmem:[%s227_s18 + $0x14] sm:$0xf0]  ;;  %v557_v7 = vor.u32 %v577_v2, %v554_v4  ;;  %v578_v9 = vld [vmem:[%s227_s18 + $0xc] sm:$0xf]  ;;  %v562_v10 = vld [vmem:[%s227_s18 + $0x18] sm:$0xf0] }
  0x2d   : > { %v561_v8 = vor.u32 %v580_v6, %v560_v5  ;;  %299 = vmatpush.bf16.msra.mxu0 %v553_v3  ;;  %v565_v11 = vor.u32 %v578_v9, %v562_v10  ;;  %v263_v12 = vld [vmem:[%s217_s19] sm:$0xf]  ;;  %s572_s24 = sshll.u32 %s825_s15, 3  ;;  %s548_s21 = sshll.u32 %s948_s8, 3 }
  0x2e   : > { %312 = vmatpush.bf16.msra.mxu1 %v557_v7  ;;  %s377_s30 = scalar_lea.hbm %s1016_s2, %s572_s24  ;;  %s253_s22 = scalar_lea.vmem [#allocation7], %s548_s21 }
  0x2f   : > { %325 = vmatpush.bf16.msra.mxu2 %v561_v8  ;;  %338 = vmatpush.bf16.msra.mxu3 %v565_v11  ;;  %s379_s4 = sshll.u32 %s253_s22, 4  ;;  %s381_s5 = sshll.u32 %s377_s30, 4  ;;  %s380_s4 = int_to_ptr.vmem [resolvable:$true] %s379_s4  ;;  %s382_s5 = int_to_ptr.hbm [resolvable:$true] %s381_s5 }
  0x30   : > { %566 = vmatmul.msk.bf16.vlgmr.msra.gmra.mxu0 %vm288_vm0, %v263_v12  ;;  %s392_s9 = scalar_lea.hbm %s1017_s3, %s572_s24  ;;  %s361_s11 = scalar_lea.sflag [#allocation4], %s948_s8 }
  0x31   : > { %567 = vmatmul.msk.bf16.vlgmr.msra.gmra.mxu1 %vm288_vm0, %v263_v12  ;;  %s729_s19 = sshra.s32 %s382_s5, 4  ;;  %s735_s18 = scalar_lea.hbm %s1016_s2, 32  ;;  %s730_s19 = int_to_ptr.hbm [resolvable:$true] %s729_s19 }
  0x32   : > { %568 = vmatmul.msk.bf16.vlgmr.msra.gmra.mxu2 %vm288_vm0, %v263_v12  ;;  %569 = vmatmul.msk.bf16.vlgmr.msra.gmra.mxu3 %vm288_vm0, %v263_v12  ;;  %s731_s15 = scalar_lea.hbm %s730_s19, 8  ;;  %p736_p6 = scmp.lt.s32.totalorder %s730_s19, %s1016_s2 }
  0x33   : > { %p732_p3 = scmp.ne.s32.totalorder %s730_s19, %s731_s15  ;;  %p737_p7 = scmp.lt.s32.totalorder %s735_s18, %s731_s15 }
  0x35   : > { %p733_p4 = pnand %p732_p3, %p908_p9  ;;  %p738_p8 = por %p737_p7, %p736_p6 }
  0x37   : > { %p734_p5 = pneg %p733_p4 }
  0x39   : > { %p739_p10 = pnand %p738_p8, %p734_p5 }
  0xad   : > { %v301_v13 = vpop.f32.mrf.mxu0 }
  0xae   : > { %v314_v14 = vpop.f32.mrf.mxu1  ;;  %v349_v16 = vmul.f32 %v301_v13, %v301_v13 }
  0xaf   : > { %v344_v15 = vadd.f32 %v314_v14, %v301_v13  ;;  %v350_v17 = vmul.f32 %v314_v14, %v314_v14 }
  0xb1   : > { %v353_v23 = vadd.f32 %v350_v17, %v349_v16 }
  0xb5   : > { %v327_v18 = vpop.f32.mrf.mxu2  ;;  %v340_v20 = vpop.f32.mrf.mxu3 }
  0xb6   : > { %v345_v19 = vadd.f32 %v344_v15, %v327_v18  ;;  %v303_v21 = vpop.f32.mrf.mxu0  ;;  %v316_v22 = vpop.f32.mrf.mxu1  ;;  %v351_v24 = vmul.f32 %v327_v18, %v327_v18  ;;  %v352_v26 = vmul.f32 %v340_v20, %v340_v20 }
  0xb8   : > { %v346_v25 = vadd.f32 %v345_v19, %v340_v20  ;;  %v354_v27 = vadd.f32 %v353_v23, %v351_v24 }
  0xba   : > { %347 = vadd.xlane.f32.xlu0 %v346_v25  ;;  %v355_v30 = vadd.f32 %v354_v27, %v352_v26 }
  0xbd   : > { %v329_v28 = vpop.f32.mrf.mxu2  ;;  %v342_v29 = vpop.f32.mrf.mxu3 }
  0xc2   : > { %356 = vadd.xlane.f32.xlu0 %v355_v30 }
 0x12d   : > { %v348_v31 = vpop.xlane.xlu0 %347 }
 0x12e   : > { %358 = vst [vmem:[%s253_s22] sm:$0xff] %v348_v31 }
 0x12f   : > { %742 = shalt.err (!%p739_p10)
}
 0x130   : > { %585 = dma.vmem_to_hbm [thread:$0]  (%p908_p9), %s380_s4, 128, %s382_s5, %s361_s11  }
 0x131   : > { %s260_s24 = scalar_lea.vmem [#allocation8], %s548_s21  ;;  %s396_s22 = sshll.u32 %s392_s9, 4  ;;  %s397_s22 = int_to_ptr.hbm [resolvable:$true] %s396_s22 }
 0x132   : > { %s394_s30 = sshll.u32 %s260_s24, 4  ;;  %s366_s6 = scalar_lea.sflag [#allocation9], %s948_s8  ;;  %s395_s30 = int_to_ptr.vmem [resolvable:$true] %s394_s30 }
 0x133   : > { %s757_s7 = sshra.s32 %s397_s22, 4  ;;  %s763_s10 = scalar_lea.hbm %s1017_s3, 32  ;;  %s758_s7 = int_to_ptr.hbm [resolvable:$true] %s757_s7 }
 0x134   : > { %s759_s19 = scalar_lea.hbm %s758_s7, 8  ;;  %p764_p1 = scmp.lt.s32.totalorder %s758_s7, %s1017_s3 }
 0x135   : > { %v357_v32 = vpop.xlane.xlu0 %356  ;;  %p760_p12 = scmp.ne.s32.totalorder %s758_s7, %s759_s19  ;;  %p765_p2 = scmp.lt.s32.totalorder %s763_s10, %s759_s19 }
 0x136   : > { %359 = vst [vmem:[%s260_s24] sm:$0xff] %v357_v32 }
 0x137   : > { %p761_p13 = pnand %p760_p12, %p908_p9  ;;  %p766_p3 = por %p765_p2, %p764_p1 }
 0x139   : > { %p762_p0 = pneg %p761_p13 }
 0x13b   : > { %p767_p4 = pnand %p766_p3, %p762_p0 }
 0x13d   : > { %770 = shalt.err (!%p767_p4)
}
 0x13e   : > { %586 = dma.vmem_to_hbm [thread:$0]  (%p908_p9), %s395_s30, 128, %s397_s22, %s366_s6  }
 0x13f PF: > { %p604_p5 = scmp.ge.s32.totalorder %s833_s17, 2  ;;  %s408_s8 = sand.u32 1, %s813_s12  }
 0x140   : > { %s409_s5 = scalar_lea.sflag [#allocation4], %s408_s8 }
 0x141   : > { %p597_p6 = pnand %p604_p5, %p915_p11 }
 0x143   : > { %p598_p7 = pneg %p597_p6 }
 0x145   : > { %804 = dma.done.wait (%p598_p7), %s409_s5, 128  }
 0x146   : > { %806 = vsyncadd (%p598_p7), %s409_s5, 4294967168  ;;  %s419_s9 = scalar_lea.sflag [#allocation9], %s408_s8 }
 0x147   : > { %808 = dma.done.wait (%p598_p7), %s419_s9, 128  }
 0x148   : > { %810 = vsyncadd (%p598_p7), %s419_s9, 4294967168  ;;  %s26_s17 = sadd.s32 1, %s833_s17   ;;  %s1023_s12 = smov %s817_s13 }
 0x149   : > { %p23_p8 = scmp.ge.s32.totalorder %s26_s17, 6   ;;  %s1024_s13 = smov %s821_s14 }
 0x14a   : > { %s1025_s14 = smov %s913_s26  ;;  %s1026_s15 = smov %s829_s16 }
 0x14b   : > { %s1027_s16 = smov %s1029_s20  ;;  %25 = sbr.rel (!%p23_p8) target bundleno = 10 (0xa), region = 103 }
 0x150   :  { %425 = vsyncpa [#allocation3], 1 }
 0x151   :  { %427 = vsyncpa [#allocation3 + $0x1], 1 }
 0x152   :  { %428 = vsyncpa [#allocation6], 1 }
 0x153   :  { %430 = vsyncpa [#allocation6 + $0x1], 1 }
 0x154   :  { %431 = vsyncpa [#allocation4], 1 }
 0x155   :  { %433 = vsyncpa [#allocation4 + $0x1], 1 }
 0x156   :  { %434 = vsyncpa [#allocation9], 1 }
 0x157   :  { %436 = vsyncpa [#allocation9 + $0x1], 1 }

</bundles_post_ra>
